<compile_context>
chip_gen: v6e
topology: v6e:2x2x1
jax: 0.10.0
libtpu: 0.0.40
codegen_flags: <defaults>
</compile_context>

<pallas_src>
import functools

import jax
import jax.numpy as jnp
from jax import lax
from jax.experimental import pallas as pl
from jax.experimental.pallas import tpu as pltpu

_NEG_BIG = -1e30          # finite "-inf" sentinel: keeps max/exp/rescale math NaN-free
_VMEM_BUDGET = 40 * 1024 * 1024


def _round_up(x, m):
    return ((x + m - 1) // m) * m


def _default_compute_dtype():
    """bf16 elementwise on chips whose VPU/EUP speak bf16 (v6e, v7x); f32 otherwise."""
    try:
        kind = jax.devices()[0].device_kind.lower()
    except Exception:
        return jnp.float32
    if ("v6" in kind) or ("v7" in kind) or ("7x" in kind):
        return jnp.bfloat16
    return jnp.float32


def _vmem_estimate(tm, tn, d_pad, itemsize):
    inputs = 2 * (tm + tn) * d_pad * itemsize   # double-buffered row + column blocks
    temps = 12 * tm * tn * 4                    # elementwise (tm, tn) temporaries (f32 worst case)
    return inputs + temps


def _normalize_kernel(x_ref, o_ref):
    """L2-normalize rows (F.normalize semantics, eps=1e-12) and cast for the MXU."""
    x = x_ref[...]
    sq = jnp.sum(x * x, axis=-1, keepdims=True)
    inv = lax.rsqrt(jnp.maximum(sq, 1e-24))     # == 1 / max(||x||, 1e-12), on the EUP
    o_ref[...] = (x * inv).astype(o_ref.dtype)


def _circle_tile_kernel(xr_ref, xc_ref, out_ref, mp_ref, sp_ref, mn_ref, sn_ref,
                        *, m, gamma, n_valid, two_b, compute_dtype):
    i = pl.program_id(0)          # row block (parallel); rows restricted to [0, 2B]
    j = pl.program_id(1)          # col block (reduction axis)
    tm = xr_ref.shape[0]
    tn = xc_ref.shape[0]
    cdt = compute_dtype
    f32 = jnp.float32
    neg_big32 = jnp.float32(_NEG_BIG)
    nb = jnp.asarray(_NEG_BIG, cdt)
    mm = jnp.asarray(m, cdt)
    zero = jnp.asarray(0.0, cdt)

    @pl.when(j == 0)
    def _init():
        mp_ref[...] = jnp.full_like(mp_ref, neg_big32)
        mn_ref[...] = jnp.full_like(mn_ref, neg_big32)
        sp_ref[...] = jnp.zeros_like(sp_ref)
        sn_ref[...] = jnp.zeros_like(sn_ref)

    # (TM, TN) cosine similarities on the MXU (f32 accumulate), then cast for the
    # (bf16-capable on v6e/v7x) elementwise pipeline.
    s = lax.dot_general(xr_ref[...], xc_ref[...], (((1,), (1,)), ((), ())),
                        preferred_element_type=jnp.float32).astype(cdt)

    # Analytic index structure: label(k) = 0 if k < 2B else k - 2B.
    ri = i * tm + lax.broadcasted_iota(jnp.int32, (tm, 1), 0)    # (TM, 1)
    cj = j * tn + lax.broadcasted_iota(jnp.int32, (1, tn), 1)    # (1, TN)
    col_ok = cj < n_valid                                        # mask padded cols
    not_diag = ri != cj
    col0 = j * tn                                                # scalar: first col of block

    @pl.when(col0 <= two_b)
    def _full():
        # Block may contain label-0 columns -> both pos and neg pairs possible.
        lab_r = jnp.where(ri < two_b, 0, ri - two_b)
        lab_c = jnp.where(cj < two_b, 0, cj - two_b)
        same = lab_r == lab_c
        pos_mask = same & not_diag & col_ok
        neg_mask = jnp.logical_not(same) & col_ok
        # pos logit = g*relu((1+m)-s)*((1-m)-s), neg logit = g*relu(s+m)*(s-m);
        # both equal g*relu(c+m)*(c-m) with c = (1-s) for pos, s for neg.
        c = jnp.where(pos_mask, jnp.asarray(1.0, cdt) - s, s)
        logit = jnp.maximum(c + mm, zero) * (c - mm)
        if gamma != 1.0:
            logit = jnp.asarray(gamma, cdt) * logit

        # Streaming masked logsumexp update for both the pos and the neg set.
        mp_old = mp_ref[...]
        mn_old = mn_ref[...]
        mp_new = jnp.maximum(mp_old, jnp.max(jnp.where(pos_mask, logit, nb),
                                             axis=1, keepdims=True).astype(f32))
        mn_new = jnp.maximum(mn_old, jnp.max(jnp.where(neg_mask, logit, nb),
                                             axis=1, keepdims=True).astype(f32))
        shift = jnp.where(pos_mask, mp_new.astype(cdt), mn_new.astype(cdt))
        # Non-member lanes may overflow exp(); the where() selects keep them out.
        e = jnp.exp(logit - shift)
        sp_ref[...] = (sp_ref[...] * jnp.exp(mp_old - mp_new)
                       + jnp.sum(jnp.where(pos_mask, e, zero), axis=1,
                                 keepdims=True, dtype=f32))
        sn_ref[...] = (sn_ref[...] * jnp.exp(mn_old - mn_new)
                       + jnp.sum(jnp.where(neg_mask, e, zero), axis=1,
                                 keepdims=True, dtype=f32))
        mp_ref[...] = mp_new
        mn_ref[...] = mn_new

    @pl.when(col0 > two_b)
    def _neg_only():
        # Every column in the block has a unique label: the only same-label pair is
        # the diagonal, so pos_mask == False and neg_mask == (i != j) & col_ok.
        neg_mask = not_diag & col_ok
        logit = jnp.maximum(s + mm, zero) * (s - mm)
        if gamma != 1.0:
            logit = jnp.asarray(gamma, cdt) * logit
        mn_old = mn_ref[...]
        mn_new = jnp.maximum(mn_old, jnp.max(jnp.where(neg_mask, logit, nb),
                                             axis=1, keepdims=True).astype(f32))
        e = jnp.exp(logit - mn_new.astype(cdt))
        sn_ref[...] = (sn_ref[...] * jnp.exp(mn_old - mn_new)
                       + jnp.sum(jnp.where(neg_mask, e, zero), axis=1,
                                 keepdims=True, dtype=f32))
        mn_ref[...] = mn_new

    @pl.when(j == pl.num_programs(1) - 1)
    def _finalize():
        sp = sp_ref[...]
        sn = sn_ref[...]
        has_p = sp > 0.0                        # >= exp(0) = 1 if any pos pair seen
        has_n = sn > 0.0
        lse_p = mp_ref[...] + jnp.log(jnp.maximum(sp, 1e-37))
        lse_n = mn_ref[...] + jnp.log(jnp.maximum(sn, 1e-37))
        z = jnp.where(has_p, lse_p, 0.0) + jnp.where(has_n, lse_n, 0.0)
        # torch.nn.Softplus(beta=1, threshold=20)
        softplus = jnp.where(z > 20.0, z, jnp.log1p(jnp.exp(jnp.minimum(z, 20.0))))
        keep = has_p & has_n & (ri < n_valid)   # mask padded rows & empty-pair rows
        # TODO(synk): a lane-dense (1, tm) output block would avoid masked vst on this
        # store; modest win, skipped to keep the (tm, 1) row-stat layout zero-risk.
        out_ref[...] = jnp.where(keep, softplus, 0.0)


def _circle_loss_xla(anchors, positives, negatives, *, m=0.1, gamma=1.0,
                     sim_dtype=jnp.bfloat16):
    """Fused pure-JAX path: tiny-batch fallback and test reference."""
    b = anchors.shape[0]
    x = jnp.concatenate([anchors, positives, negatives], axis=0).astype(jnp.float32)
    n = x.shape[0]
    labels = jnp.concatenate(
        [jnp.zeros((2 * b,), jnp.float32), jnp.arange(b, dtype=jnp.float32)])
    xn = x * lax.rsqrt(jnp.maximum(jnp.sum(x * x, axis=1, keepdims=True), 1e-24))
    xn = xn.astype(sim_dtype)
    mat = jnp.dot(xn, xn.T, preferred_element_type=jnp.float32)
    same = labels[:, None] == labels[None, :]
    eye = jnp.eye(n, dtype=bool)
    pos_mask = same & ~eye
    neg_mask = ~same
    pos_logit = gamma * jnp.maximum((1.0 + m) - mat, 0.0) * ((1.0 - m) - mat)
    neg_logit = gamma * jnp.maximum(mat + m, 0.0) * (mat - m)

    def mlse(lg, mk):
        masked = jnp.where(mk, lg, -jnp.inf)
        has = jnp.any(mk, axis=1)
        out = jax.scipy.special.logsumexp(masked, axis=1)
        return jnp.where(has, out, 0.0), has

    lp, hp = mlse(pos_logit, pos_mask)
    ln_, hn = mlse(neg_logit, neg_mask)
    z = lp + ln_
    sp = jnp.where(z > 20.0, z, jnp.log1p(jnp.exp(jnp.minimum(z, 20.0))))
    losses = jnp.where(hp & hn, sp, 0.0)
    nnz = jnp.sum(losses > 0.0)
    return jnp.where(nnz > 0, jnp.sum(losses) / nnz, 0.0)


def circle_loss(anchors, positives, negatives, *, m=0.1, gamma=1.0,
                block_m=256, block_n=1024, sim_dtype=jnp.bfloat16,
                compute_dtype=None, xla_fallback_max_n=128):
    """Forward of CircleLoss. anchors/positives/negatives: (B, D)."""
    assert anchors.shape == positives.shape == negatives.shape
    b, d = anchors.shape
    n = 3 * b
    m = float(m)
    gamma = float(gamma)

    # Tiny batches (the module's B=8 path) are dominated by launch/pad/HBM overhead:
    # use the fused XLA path instead of the two-pallas_call pipeline.
    if n <= xla_fallback_max_n:
        return _circle_loss_xla(anchors, positives, negatives, m=m, gamma=gamma,
                                sim_dtype=sim_dtype)

    if compute_dtype is None:
        compute_dtype = _default_compute_dtype()

    # One O(N*D) concat+pad (cheap next to the O(N^2*D) pairwise work).
    # TODO(synk): if the caller already holds the concatenated embeddings, accept
    # them directly to skip this extra HBM copy.
    emb = jnp.concatenate([anchors, positives, negatives], axis=0).astype(jnp.float32)

    d_pad = max(128, _round_up(d, 128))
    n128 = _round_up(n, 128)
    two_b = 2 * b
    # Rows past 2B have unique labels -> no positive pairs -> loss identically 0.
    rows_needed = min(two_b + 1, n)
    itemsize = jnp.dtype(sim_dtype).itemsize

    # Row tile: <= block_m, <= what exists, and small enough that the v7x megacore
    # gets >= 2 row blocks whenever there are > 128 interesting rows.
    tm = min(block_m, n128, max(128, _round_up((rows_needed + 1) // 2, 128)))
    # Column tile: a multiple of tm (no lcm padding blow-up), shrunk while column
    # padding would exceed 25% of N or the VMEM estimate would exceed the budget
    # (keeps the working set inside v7x's 64 MiB VMEM even for large D / f32 sims).
    tn = min(block_n, n128)
    tn = max(tm, (tn // tm) * tm)
    while tn > tm and (_vmem_estimate(tm, tn, d_pad, itemsize) > _VMEM_BUDGET
                       or 4 * (_round_up(n, tn) - n) > n):
        tn = max(tm, ((tn // 2) // tm) * tm)

    n_pad = _round_up(n, tn)            # column extent (full matrix)
    n_rows_pad = _round_up(rows_needed, tm)   # row extent (only rows that can be nonzero)
    grid_r = n_rows_pad // tm
    grid_c = n_pad // tn

    emb = jnp.pad(emb, ((0, n_pad - n), (0, d_pad - d)))

    # Prepass: normalize once (instead of per column tile) and cast for the MXU.
    xn = pl.pallas_call(
        _normalize_kernel,
        out_shape=jax.ShapeDtypeStruct((n_pad, d_pad), sim_dtype),
        grid=(n_pad // tm,),
        in_specs=[pl.BlockSpec((tm, d_pad), lambda i: (i, 0))],
        out_specs=pl.BlockSpec((tm, d_pad), lambda i: (i, 0)),
        compiler_params=pltpu.CompilerParams(dimension_semantics=("parallel",)),
    )(emb)

    cost = pl.CostEstimate(
        flops=2 * n_rows_pad * n_pad * d_pad,
        transcendentals=n_rows_pad * n_pad,
        # Row blocks stream once; column blocks re-stream once per row block.
        bytes_accessed=(n_rows_pad + grid_r * n_pad) * d_pad * itemsize + n_rows_pad * 4,
    )

    kernel = functools.partial(_circle_tile_kernel, m=m, gamma=gamma,
                               n_valid=n, two_b=two_b, compute_dtype=compute_dtype)
    losses = pl.pallas_call(
        kernel,
        out_shape=jax.ShapeDtypeStruct((n_rows_pad, 1), jnp.float32),
        grid_spec=pltpu.PrefetchScalarGridSpec(
            num_scalar_prefetch=0,
            grid=(grid_r, grid_c),
            in_specs=[
                pl.BlockSpec((tm, d_pad), lambda i, j: (i, 0)),   # row block of xn
                pl.BlockSpec((tn, d_pad), lambda i, j: (j, 0)),   # col block of xn
            ],
            out_specs=pl.BlockSpec((tm, 1), lambda i, j: (i, 0)),
            scratch_shapes=[
                pltpu.VMEM((tm, 1), jnp.float32),   # running max, pos
                pltpu.VMEM((tm, 1), jnp.float32),   # running sum, pos
                pltpu.VMEM((tm, 1), jnp.float32),   # running max, neg
                pltpu.VMEM((tm, 1), jnp.float32),   # running sum, neg
            ],
        ),
        compiler_params=pltpu.CompilerParams(
            dimension_semantics=("parallel", "arbitrary"),
            vmem_limit_bytes=48 * 1024 * 1024,
        ),
        cost_estimate=cost,
    )(xn, xn)

    # AvgNonZeroReducer: mean over strictly positive per-element losses (0 if none).
    # Rows outside the restricted row grid are provably zero and contribute nothing.
    per_row = losses[:, 0]
    nnz = jnp.sum((per_row > 0.0).astype(jnp.float32))
    return jnp.where(nnz > 0.0, jnp.sum(per_row) / nnz, jnp.zeros((), jnp.float32))


if __name__ == "__main__":
    key = jax.random.PRNGKey(0)
    ka, kp, kn, kb = jax.random.split(key, 4)

    # Module-consistent small shapes (batch=8, embedding_dim=32).
    B, D = 8, 32
    anchors = jax.random.normal(ka, (B, D), dtype=jnp.float32)
    positives = jax.random.normal(kp, (B, D), dtype=jnp.float32)
    negatives = jax.random.normal(kn, (B, D), dtype=jnp.float32)
    ref_small = _circle_loss_xla(anchors, positives, negatives, m=0.1, gamma=1.0,
                                 sim_dtype=jnp.bfloat16)

    # 1) Default dispatch: tiny N takes the fused-XLA fallback.
    out_fb = jax.block_until_ready(
        circle_loss(anchors, positives, negatives, m=0.1, gamma=1.0))
    assert jnp.isfinite(out_fb), f"non-finite loss: {out_fb}"
    assert jnp.allclose(out_fb, ref_small, rtol=3e-2, atol=3e-2), (out_fb, ref_small)

    # 2) Force the Pallas kernel at the same shapes (single padded tile).
    out_k = jax.block_until_ready(
        circle_loss(anchors, positives, negatives, m=0.1, gamma=1.0,
                    xla_fallback_max_n=0))
    assert jnp.isfinite(out_k), f"non-finite loss: {out_k}"
    assert jnp.allclose(out_k, ref_small, rtol=3e-2, atol=3e-2), (out_k, ref_small)

    # 3) All-f32 path for a tight check against exact-ish semantics.
    out_f32 = jax.block_until_ready(
        circle_loss(anchors, positives, negatives, m=0.1, gamma=1.0,
                    sim_dtype=jnp.float32, compute_dtype=jnp.float32,
                    xla_fallback_max_n=0))
    ref_f32 = _circle_loss_xla(anchors, positives, negatives, m=0.1, gamma=1.0,
                               sim_dtype=jnp.float32)
    assert jnp.allclose(out_f32, ref_f32, rtol=1e-4, atol=1e-4), (out_f32, ref_f32)

    # 4) Multi-tile: N = 288 with 128x128 tiles -> row grid 2 (rows [0, 2B] only),
    #    col grid 3, exercising the streaming LSE, the neg-only column tile
    #    (first column 256 > 2B = 192), padded columns, and gamma != 1.
    B2, D2 = 96, 48
    k1, k2, k3 = jax.random.split(kb, 3)
    a2 = jax.random.normal(k1, (B2, D2), dtype=jnp.float32)
    p2 = jax.random.normal(k2, (B2, D2), dtype=jnp.float32)
    n2 = jax.random.normal(k3, (B2, D2), dtype=jnp.float32)
    out2 = jax.block_until_ready(
        circle_loss(a2, p2, n2, m=0.25, gamma=2.0, block_m=128, block_n=128))
    ref2 = _circle_loss_xla(a2, p2, n2, m=0.25, gamma=2.0, sim_dtype=jnp.bfloat16)
    assert jnp.isfinite(out2), f"non-finite loss: {out2}"
    assert jnp.allclose(out2, ref2, rtol=3e-2, atol=3e-2), (out2, ref2)

    print("KERNEL_OK")
</pallas_src>

<mosaic_0001>
module attributes {stable_mosaic.version = 11 : i64} {
  func.func @_normalize_kernel(%arg0: i32, %arg1: memref<128x128xf32, #tpu.memory_space<vmem>>, %arg2: memref<128x128xbf16, #tpu.memory_space<vmem>>) attributes {dimension_semantics = [#tpu.dimension_semantics<parallel>], iteration_bounds = array<i64: 1>, scalar_prefetch = 0 : i64, scratch_operands = 0 : i64, tpu.core_type = #tpu.core_type<tc>, window_params = [{transform_indices = @transform_0, window_bounds = array<i64: 128, 128>}, {transform_indices = @transform_1, window_bounds = array<i64: 128, 128>}]} {
    %c0 = arith.constant 0 : index
    %c0_0 = arith.constant 0 : index
    %0 = vector.load %arg1[%c0, %c0_0] : memref<128x128xf32, #tpu.memory_space<vmem>>, vector<128x128xf32>
    %1 = arith.mulf %0, %0 : vector<128x128xf32>
    %cst = arith.constant dense<0.000000e+00> : vector<128xf32>
    %2 = vector.multi_reduction <add>, %1, %cst [1] : vector<128x128xf32> to vector<128xf32>
    %3 = vector.shape_cast %2 : vector<128xf32> to vector<128x1xf32>
    %cst_1 = arith.constant 1.000000e-24 : f32
    %4 = vector.broadcast %cst_1 : f32 to vector<128x1xf32>
    %5 = arith.maximumf %3, %4 : vector<128x1xf32>
    %6 = math.rsqrt %5 : vector<128x1xf32>
    %7 = vector.broadcast %6 : vector<128x1xf32> to vector<128x128xf32>
    %8 = arith.mulf %0, %7 : vector<128x128xf32>
    %9 = arith.truncf %8 : vector<128x128xf32> to vector<128x128xbf16>
    %c0_2 = arith.constant 0 : index
    %c0_3 = arith.constant 0 : index
    %10 = vector.load %arg2[%c0_2, %c0_3] : memref<128x128xbf16, #tpu.memory_space<vmem>>, vector<128x128xbf16>
    tpu.vector_store %arg2[%c0_2, %c0_3], %9 {strides = array<i32>} : memref<128x128xbf16, #tpu.memory_space<vmem>>, vector<128x128xbf16>,
    return
  }
  func.func @transform_0(%arg0: i32) -> (i32, i32) {
    %c0_i32 = arith.constant 0 : i32
    %c0_i32_0 = arith.constant 0 : i32
    return %arg0, %c0_i32 : i32, i32
  }
  func.func @transform_1(%arg0: i32) -> (i32, i32) {
    %c0_i32 = arith.constant 0 : i32
    %c0_i32_0 = arith.constant 0 : i32
    return %arg0, %c0_i32 : i32, i32
  }
}

</mosaic_0001>

<bundles_post_ra>
// kernel: tpu_custom_call.1
= control target key start
LH: loop header
LB: loop body
LE: loop exit
PB: predicated region body
PF: predicated region fallthrough
CT: control target
= control target key end

     0   :  { %6 = vsyncpa [#allocation3], 0  ;;  %s495_s0 = inlined_call_operand.hbm [shape: f32[128,128], index: 0, kind: input, shape index: {}]   ;;  %s496_s1 = inlined_call_operand.hbm [shape: bf16[128,128], index: 1, kind: output, shape index: {}]  }
   0x1   :  { %7 = vsyncpa [#allocation4], 0  ;;  %s393_s6 = smov [#allocation2]  }
   0x2   :  { %s13_s7 = sshll.u32 %s393_s6, 4  ;;  %s14_s7 = int_to_ptr.vmem [resolvable:$true] %s13_s7 }
   0x3   :  { %s357_s8 = scalar_lea.vmem %s14_s7, 2048  ;;  %p362_p1 = scmp.lt.s32.totalorder %s14_s7, %s14_s7 }
   0x4   :  { %p358_p0 = scmp.ne.s32.totalorder %s14_s7, %s357_s8  ;;  %p363_p2 = scmp.lt.s32.totalorder %s357_s8, %s357_s8 }
   0x6   :  { %p364_p3 = por %p363_p2, %p362_p1 }
   0x8   :  { %p365_p4 = pnand %p364_p3, %p358_p0 }
   0xa   :  { %368 = shalt.err (!%p365_p4)
}
   0xb   :  { %s394_s9 = smov 128   ;;  %s395_s10 = smov 8  }
   0xc   :  { %19 = dma.hbm_to_vmem [thread:$0]  %s495_s0, 2048, %s14_s7, [#allocation3], %s394_s9, %s394_s9, %s395_s10  }
   0xd   :  { %389 = dma.done.wait [#allocation3], 2048  }
   0xe   :  { %390 = vsyncadd [#allocation3], 4294965248  ;;  %v412_v0 = vld [vmem:[#allocation2 + $0x10] sm:$0xff]  ;;  %v414_v1 = vld [vmem:[#allocation2] sm:$0xff]  ;;  %s396_s0 = smov [#allocation5]  }
   0xf   :  { %v416_v2 = vld [vmem:[#allocation2 + $0x18] sm:$0xff]  ;;  %v41_v3 = vmul.f32 %v412_v0, %v412_v0  ;;  %v39_v4 = vmul.f32 %v414_v1, %v414_v1  ;;  %v422_v5 = vld [vmem:[#allocation2 + $0x8] sm:$0xff]  ;;  %v430_v9 = vld [vmem:[#allocation2 + $0x20] sm:$0xff]  ;;  %s220_s13 = sshll.u32 %s396_s0, 4  ;;  %s221_s13 = int_to_ptr.vmem [resolvable:$true] %s220_s13 }
  0x10   :  { %v42_v6 = vmul.f32 %v416_v2, %v416_v2  ;;  %v40_v7 = vmul.f32 %v422_v5, %v422_v5  ;;  %v428_v8 = vld [vmem:[#allocation2 + $0x28] sm:$0xff]  ;;  %v43_v11 = vmul.f32 %v430_v9, %v430_v9  ;;  %v436_v12 = vld [vmem:[#allocation2 + $0x38] sm:$0xff]  ;;  %v438_v13 = vld [vmem:[#allocation2 + $0x30] sm:$0xff]  ;;  %s369_s14 = scalar_lea.vmem %s221_s13, 1024  ;;  %p374_p6 = scmp.lt.s32.totalorder %s221_s13, %s221_s13 }
  0x11   :  { %59 = vadd.xlane.f32.xlu1 %v41_v3  ;;  %55 = vadd.xlane.f32.xlu0 %v39_v4  ;;  %v44_v10 = vmul.f32 %v428_v8, %v428_v8  ;;  %v46_v14 = vmul.f32 %v436_v12, %v436_v12  ;;  %v45_v15 = vmul.f32 %v438_v13, %v438_v13  ;;  %v444_v16 = vld [vmem:[#allocation2 + $0x48] sm:$0xff]  ;;  %v446_v17 = vld [vmem:[#allocation2 + $0x40] sm:$0xff]  ;;  %v452_v20 = vld [vmem:[#allocation2 + $0x58] sm:$0xff]  ;;  %p370_p5 = scmp.ne.s32.totalorder %s221_s13, %s369_s14  ;;  %p375_p7 = scmp.lt.s32.totalorder %s369_s14, %s369_s14 }
  0x12   :  { %v48_v18 = vmul.f32 %v444_v16, %v444_v16  ;;  %v47_v19 = vmul.f32 %v446_v17, %v446_v17  ;;  %v454_v21 = vld [vmem:[#allocation2 + $0x50] sm:$0xff]  ;;  %v50_v22 = vmul.f32 %v452_v20, %v452_v20  ;;  %v460_v24 = vld [vmem:[#allocation2 + $0x68] sm:$0xff]  ;;  %v462_v25 = vld [vmem:[#allocation2 + $0x60] sm:$0xff] }
  0x13   :  { %v49_v23 = vmul.f32 %v454_v21, %v454_v21  ;;  %v52_v26 = vmul.f32 %v460_v24, %v460_v24  ;;  %v51_v27 = vmul.f32 %v462_v25, %v462_v25  ;;  %v468_v28 = vld [vmem:[#allocation2 + $0x78] sm:$0xff]  ;;  %v470_v29 = vld [vmem:[#allocation2 + $0x70] sm:$0xff]  ;;  %p376_p8 = por %p375_p7, %p374_p6 }
  0x14   :  { %v54_v30 = vmul.f32 %v468_v28, %v468_v28  ;;  %v53_v31 = vmul.f32 %v470_v29, %v470_v29 }
  0x15   :  { %61 = vadd.xlane.f32.xlu1 %v42_v6  ;;  %57 = vadd.xlane.f32.xlu0 %v40_v7  ;;  %p377_p9 = pnand %p376_p8, %p370_p5 }
  0x19   :  { %65 = vadd.xlane.f32.xlu1 %v44_v10  ;;  %63 = vadd.xlane.f32.xlu0 %v43_v11 }
  0x1d   :  { %69 = vadd.xlane.f32.xlu1 %v46_v14  ;;  %67 = vadd.xlane.f32.xlu0 %v45_v15 }
  0x21   :  { %73 = vadd.xlane.f32.xlu1 %v48_v18  ;;  %71 = vadd.xlane.f32.xlu0 %v47_v19 }
  0x25   :  { %77 = vadd.xlane.f32.xlu1 %v50_v22  ;;  %75 = vadd.xlane.f32.xlu0 %v49_v23 }
  0x29   :  { %81 = vadd.xlane.f32.xlu1 %v52_v26  ;;  %79 = vadd.xlane.f32.xlu0 %v51_v27 }
  0x2d   :  { %85 = vadd.xlane.f32.xlu1 %v54_v30  ;;  %83 = vadd.xlane.f32.xlu0 %v53_v31 }
  0x9a   :  { %v60_v32 = vpop.xlane.xlu1 %59  ;;  %v56_v33 = vpop.xlane.xlu0 %55 }
  0x9b   :  { %v89_v34 = vmax.f32 %v60_v32, 1e-24  ;;  %v87_v35 = vmax.f32 %v56_v33, 1e-24 }
  0x9d   :  { %317 = vrsqrt.f32 %v89_v34 }
  0x9e   :  { %v62_v36 = vpop.xlane.xlu1 %61  ;;  %v58_v37 = vpop.xlane.xlu0 %57  ;;  %319 = vrsqrt.f32 %v87_v35 }
  0x9f   :  { %v90_v38 = vmax.f32 %v62_v36, 1e-24  ;;  %v88_v39 = vmax.f32 %v58_v37, 1e-24 }
  0xa1   :  { %321 = vrsqrt.f32 %v90_v38 }
  0xa2   :  { %323 = vrsqrt.f32 %v88_v39  ;;  %v66_v40 = vpop.xlane.xlu1 %65  ;;  %v64_v41 = vpop.xlane.xlu0 %63 }
  0xa3   :  { %v92_v42 = vmax.f32 %v66_v40, 1e-24  ;;  %v91_v43 = vmax.f32 %v64_v41, 1e-24 }
  0xa5   :  { %325 = vrsqrt.f32 %v92_v42 }
  0xa6   :  { %327 = vrsqrt.f32 %v91_v43  ;;  %v70_v44 = vpop.xlane.xlu1 %69  ;;  %v68_v45 = vpop.xlane.xlu0 %67 }
  0xa7   :  { %v94_v46 = vmax.f32 %v70_v44, 1e-24  ;;  %v93_v47 = vmax.f32 %v68_v45, 1e-24 }
  0xa9   :  { %329 = vrsqrt.f32 %v94_v46 }
  0xaa   :  { %331 = vrsqrt.f32 %v93_v47  ;;  %v74_v48 = vpop.xlane.xlu1 %73  ;;  %v72_v49 = vpop.xlane.xlu0 %71 }
  0xab   :  { %v96_v50 = vmax.f32 %v74_v48, 1e-24  ;;  %v95_v51 = vmax.f32 %v72_v49, 1e-24  ;;  %v318_v52 = vpop.eup %317 }
  0xac   :  { %v320_v53 = vpop.eup %319  ;;  %v121_v58 = vmul.f32 %v318_v52, %v412_v0 }
  0xad   :  { %333 = vrsqrt.f32 %v96_v50  ;;  %v119_v62 = vmul.f32 %v320_v53, %v414_v1 }
  0xae   :  { %v322_v54 = vpop.eup %321  ;;  %335 = vrsqrt.f32 %v95_v51  ;;  %v78_v55 = vpop.xlane.xlu1 %77 }
  0xaf   :  { %v76_v56 = vpop.xlane.xlu0 %75  ;;  %v324_v57 = vpop.eup %323  ;;  %v122_v59 = vmul.f32 %v322_v54, %v416_v2  ;;  %v98_v60 = vmax.f32 %v78_v55, 1e-24 }
  0xb0   :  { %v97_v61 = vmax.f32 %v76_v56, 1e-24  ;;  %v120_v63 = vmul.f32 %v324_v57, %v422_v5 }
  0xb1   :  { %v272_v3 = vpack.c.bf16 %v122_v59, %v121_v58  ;;  %337 = vrsqrt.f32 %v98_v60 }
  0xb2   :  { %v326_v4 = vpop.eup %325  ;;  %v267_v6 = vpack.c.bf16 %v120_v63, %v119_v62  ;;  %339 = vrsqrt.f32 %v97_v61  ;;  %v82_v7 = vpop.xlane.xlu1 %81 }
  0xb3   :  { %v80_v10 = vpop.xlane.xlu0 %79  ;;  %v328_v11 = vpop.eup %327  ;;  %304 = vst [vmem:[#allocation5 + $0x8] sm:$0xff] %v272_v3   ;;  %v124_v14 = vmul.f32 %v326_v4, %v428_v8  ;;  %v100_v0 = vmax.f32 %v82_v7, 1e-24 }
  0xb4   :  { %v99_v15 = vmax.f32 %v80_v10, 1e-24  ;;  %268 = vst [vmem:[#allocation5] sm:$0xff] %v267_v6   ;;  %v123_v2 = vmul.f32 %v328_v11, %v430_v9 }
  0xb5   :  { %341 = vrsqrt.f32 %v100_v0 }
  0xb6   :  { %v330_v1 = vpop.eup %329  ;;  %v277_v18 = vpack.c.bf16 %v124_v14, %v123_v2  ;;  %343 = vrsqrt.f32 %v99_v15  ;;  %v86_v5 = vpop.xlane.xlu1 %85 }
  0xb7   :  { %v84_v19 = vpop.xlane.xlu0 %83  ;;  %v332_v22 = vpop.eup %331  ;;  %v126_v23 = vmul.f32 %v330_v1, %v436_v12  ;;  %v102_v26 = vmax.f32 %v86_v5, 1e-24 }
  0xb8   :  { %v101_v27 = vmax.f32 %v84_v19, 1e-24  ;;  %305 = vst [vmem:[#allocation5 + $0x10] sm:$0xff] %v277_v18   ;;  %v125_v30 = vmul.f32 %v332_v22, %v438_v13 }
  0xb9   :  { %345 = vrsqrt.f32 %v102_v26 }
  0xba   :  { %v334_v8 = vpop.eup %333  ;;  %v282_v31 = vpack.c.bf16 %v126_v23, %v125_v30  ;;  %347 = vrsqrt.f32 %v101_v27 }
  0xbb   :  { %v336_v32 = vpop.eup %335  ;;  %v128_v9 = vmul.f32 %v334_v8, %v444_v16 }
  0xbc   :  { %306 = vst [vmem:[#allocation5 + $0x18] sm:$0xff] %v282_v31   ;;  %v127_v33 = vmul.f32 %v336_v32, %v446_v17 }
  0xbe   :  { %v338_v34 = vpop.eup %337  ;;  %v287_v35 = vpack.c.bf16 %v128_v9, %v127_v33 }
  0xbf   :  { %v340_v36 = vpop.eup %339  ;;  %v130_v12 = vmul.f32 %v338_v34, %v452_v20 }
  0xc0   :  { %307 = vst [vmem:[#allocation5 + $0x20] sm:$0xff] %v287_v35   ;;  %v129_v37 = vmul.f32 %v340_v36, %v454_v21 }
  0xc2   :  { %v342_v38 = vpop.eup %341  ;;  %v292_v13 = vpack.c.bf16 %v130_v12, %v129_v37 }
  0xc3   :  { %v344_v39 = vpop.eup %343  ;;  %v132_v40 = vmul.f32 %v342_v38, %v460_v24 }
  0xc4   :  { %308 = vst [vmem:[#allocation5 + $0x28] sm:$0xff] %v292_v13   ;;  %v131_v41 = vmul.f32 %v344_v39, %v462_v25 }
  0xc6   :  { %v346_v16 = vpop.eup %345  ;;  %v297_v42 = vpack.c.bf16 %v132_v40, %v131_v41 }
  0xc7   :  { %v348_v17 = vpop.eup %347  ;;  %v134_v43 = vmul.f32 %v346_v16, %v468_v28 }
  0xc8   :  { %309 = vst [vmem:[#allocation5 + $0x30] sm:$0xff] %v297_v42   ;;  %v133_v20 = vmul.f32 %v348_v17, %v470_v29 }
  0xca   :  { %v302_v21 = vpack.c.bf16 %v134_v43, %v133_v20 }
  0xcc   :  { %310 = vst [vmem:[#allocation5 + $0x38] sm:$0xff] %v302_v21  }
  0xcd   :  { %380 = shalt.err (!%p377_p9)
}
  0xce   :  { %s397_s15 = smov 64   ;;  %s398_s16 = smov 4  }
  0xcf   :  { %226 = dma.vmem_to_hbm [thread:$0]  %s221_s13, 1024, %s496_s1, [#allocation4], %s397_s15, %s397_s15, %s398_s16  }
  0xd0   :  { %391 = dma.done.wait [#allocation4], 1024  }
  0xd1   :  { %392 = vsyncadd [#allocation4], 4294966272 }
  0xd2   :  { %230 = vsyncpa [#allocation3], 1 }
  0xd3   :  { %231 = vsyncpa [#allocation4], 1 }

</bundles_post_ra>
